<compile_context>
chip_gen: v5e
topology: v5e:2x2
jax: 0.10.0
libtpu: 0.0.40
codegen_flags: <defaults>
</compile_context>

<pallas_src>
import functools

import jax
import jax.numpy as jnp
from jax.experimental import pallas as pl
from jax.experimental.pallas import tpu as pltpu


# ----------------------------------------------------------------------------
# Fused kernel: chunked windowed MHSA + residual/LN1 + FFN + residual/LN2
# ----------------------------------------------------------------------------
def _multi_attn_layer_kernel(x_ref, mask_ref, inw_ref, inb_ref, outw_ref, outb_ref,
                             ln1g_ref, ln1b_ref, w1_ref, b1_ref, w2_ref, b2_ref,
                             ln2g_ref, ln2b_ref, o_ref, heads_ref, *, nhead, chunk):
    eps = 1e-5
    f32 = jnp.float32
    x = x_ref[0]                                    # (T, D) in the input dtype
    T, D = x.shape
    hd = D // nhead
    n = T // chunk                                  # number of attention chunks
    scale = 1.0 / float(hd) ** 0.5
    cdt = x.dtype                                   # matmul operand dtype (bf16 stays bf16)

    # --- QKV projection: one (T, D) @ (D, 3D) MXU matmul, f32 accumulate,
    #     cast to compute dtype ONCE (smaller live intermediate). ------------
    qkv = jnp.dot(x, inw_ref[...], preferred_element_type=f32)
    qkv = (qkv + inb_ref[...].astype(f32)).astype(cdt)          # (T, 3D)

    mask = mask_ref[...]                            # (chunk, chunk) additive f32 bias

    # --- per-head chunked attention; head outputs written into (T, D) scratch ---
    # Static loop: nhead is small; each head's intermediates are consumed by the
    # scratch store before the next head's are produced.
    for h in range(nhead):
        qh = qkv[:, h * hd:(h + 1) * hd].reshape(n, chunk, hd)
        kh = qkv[:, D + h * hd:D + (h + 1) * hd].reshape(n, chunk, hd)
        vh = qkv[:, 2 * D + h * hd:2 * D + (h + 1) * hd].reshape(n, chunk, hd)

        s = jnp.einsum("nqd,nkd->nqk", qh, kh,
                       preferred_element_type=f32)               # (n, chunk, chunk)
        s = s * scale + mask                                     # block-diag window bias
        s = s - jnp.max(s, axis=-1, keepdims=True)
        p = jnp.exp(s)                                           # masked entries -> exact 0
        denom = jnp.sum(p, axis=-1, keepdims=True)               # (n, chunk, 1)

        oh = jnp.einsum("nqk,nkd->nqd", p.astype(cdt), vh,
                        preferred_element_type=f32)              # (n, chunk, hd)
        # Deferred softmax normalization on the small (chunk, hd) output; EUP recip.
        oh = oh * pl.reciprocal(denom, approx=True)
        heads_ref[:, h * hd:(h + 1) * hd] = oh.reshape(T, hd).astype(cdt)

    # --- single full-depth out-projection: (T, D) @ (D, D) ---------------------
    attn = jnp.dot(heads_ref[...], outw_ref[...], preferred_element_type=f32)
    attn = attn + outb_ref[...].astype(f32)

    # --- residual + LayerNorm1 (f32 statistics) --------------------------------
    h1 = x.astype(f32) + attn
    mu = jnp.mean(h1, axis=-1, keepdims=True)
    var = jnp.mean((h1 - mu) ** 2, axis=-1, keepdims=True)
    h1 = (h1 - mu) * jax.lax.rsqrt(var + eps)
    h1 = h1 * ln1g_ref[...].astype(f32) + ln1b_ref[...].astype(f32)

    # --- FFN: linear1 -> ReLU -> linear2 (weights pre-transposed) --------------
    ff = jnp.dot(h1.astype(cdt), w1_ref[...], preferred_element_type=f32)
    ff = jnp.maximum(ff + b1_ref[...].astype(f32), 0.0)
    ff = jnp.dot(ff.astype(cdt), w2_ref[...], preferred_element_type=f32)
    ff = ff + b2_ref[...].astype(f32)

    # --- residual + LayerNorm2 --------------------------------------------------
    h2 = h1 + ff
    mu2 = jnp.mean(h2, axis=-1, keepdims=True)
    var2 = jnp.mean((h2 - mu2) ** 2, axis=-1, keepdims=True)
    h2 = (h2 - mu2) * jax.lax.rsqrt(var2 + eps)
    h2 = h2 * ln2g_ref[...].astype(f32) + ln2b_ref[...].astype(f32)

    o_ref[0] = h2.astype(o_ref.dtype)


# ----------------------------------------------------------------------------
# Host-side helpers
# ----------------------------------------------------------------------------
def _choose_seq_tile(S, W, target):
    """Largest tile <= max(target, W) that divides S, is a multiple of the window
    size, and satisfies the TPU (8, 128) block rule (multiple of 8, or == S)."""
    cap = max(target, W)
    best = S                                   # full sequence is always a legal block
    for t in range(W, min(S, cap) + 1, W):
        if S % t == 0 and (t % 8 == 0 or t == S):
            best = t
    return best


def _choose_chunk(T, W, target=128):
    """Attention chunk: multiple of W, divides T, prefer a multiple of 8 that is
    >= min(target, T) for MXU lane efficiency (scores lane dim = chunk)."""
    cands = [c for c in range(W, T + 1, W) if T % c == 0]
    goal = min(target, T)
    pref = [c for c in cands if c >= goal and c % 8 == 0]
    if pref:
        return pref[0]
    pref = [c for c in cands if c >= goal]
    if pref:
        return pref[0]
    return T


def prepare_params(params):
    """One-time weight preprocessing (transposes / bias row-reshapes).
    Hoisted out of the per-call path so inference loops don't pay HBM relayouts."""
    row2d = lambda v: v.reshape(1, -1)
    return {
        "in_w_t": jnp.transpose(params["in_w"]),    # (D, 3D)
        "in_b": row2d(params["in_b"]),
        "out_w_t": jnp.transpose(params["out_w"]),  # (D, D)
        "out_b": row2d(params["out_b"]),
        "ln1_g": row2d(params["ln1_g"]),
        "ln1_b": row2d(params["ln1_b"]),
        "w1_t": jnp.transpose(params["w1"]),        # (D, F)
        "b1": row2d(params["b1"]),
        "w2_t": jnp.transpose(params["w2"]),        # (F, D)
        "b2": row2d(params["b2"]),
        "ln2_g": row2d(params["ln2_g"]),
        "ln2_b": row2d(params["ln2_b"]),
    }


def multi_attn_layer(src, prep, *, nhead, window_size, seq_tile=256):
    B, S, D = src.shape
    assert S % window_size == 0, "seq_len must be divisible by window_size"
    assert D % nhead == 0, "d_model must be divisible by nhead"
    F = prep["w1_t"].shape[1]

    T = _choose_seq_tile(S, window_size, seq_tile)
    C = _choose_chunk(T, window_size)
    grid = (B, S // T)

    # Precomputed (C, C) block-diagonal additive window mask (0 inside window,
    # -1e30 outside); grid-invariant kernel input.
    widx = jnp.arange(C) // window_size
    mask_bias = jnp.where(widx[:, None] == widx[None, :], 0.0, -1e30).astype(jnp.float32)

    def const(shape):                          # replicated (grid-invariant) operand
        return pl.BlockSpec(shape, lambda b, s: (0, 0))

    kernel = functools.partial(_multi_attn_layer_kernel, nhead=nhead, chunk=C)

    # --- VMEM budget (weights are double-buffered by the pipeline) -------------
    def _nbytes(a):
        return int(a.size) * a.dtype.itemsize

    w_bytes = sum(_nbytes(prep[k]) for k in prep)
    act_bytes = T * D * src.dtype.itemsize
    inter_bytes = 4 * (3 * T * D + T * C + T * F + 3 * T * D)   # f32 intermediates (rough)
    vmem_est = 2 * w_bytes + 4 * act_bytes + act_bytes + inter_bytes
    vmem_limit = int(min(128 * 1024 * 1024, max(32 * 1024 * 1024, 2 * vmem_est)))

    # --- advisory cost estimate for the XLA scheduler ---------------------------
    flops = 2 * B * S * D * (3 * D + D + 2 * F) + 4 * B * S * C * D
    transcendentals = B * S * C * nhead
    bytes_accessed = w_bytes + 2 * B * S * D * src.dtype.itemsize + _nbytes(mask_bias)
    cost = pl.CostEstimate(flops=int(flops), transcendentals=int(transcendentals),
                           bytes_accessed=int(bytes_accessed))

    return pl.pallas_call(
        kernel,
        out_shape=jax.ShapeDtypeStruct((B, S, D), src.dtype),
        grid=grid,
        in_specs=[
            pl.BlockSpec((1, T, D), lambda b, s: (b, s, 0)),   # activations
            const((C, C)),          # window mask (additive bias)
            const((D, 3 * D)),      # in_proj weight (pre-transposed)
            const((1, 3 * D)),      # in_proj bias
            const((D, D)),          # out_proj weight (pre-transposed)
            const((1, D)),          # out_proj bias
            const((1, D)),          # ln1 gamma
            const((1, D)),          # ln1 beta
            const((D, F)),          # linear1 weight (pre-transposed)
            const((1, F)),          # linear1 bias
            const((F, D)),          # linear2 weight (pre-transposed)
            const((1, D)),          # linear2 bias
            const((1, D)),          # ln2 gamma
            const((1, D)),          # ln2 beta
        ],
        out_specs=pl.BlockSpec((1, T, D), lambda b, s: (b, s, 0)),
        scratch_shapes=[pltpu.VMEM((T, D), src.dtype)],        # per-head output assembly
        compiler_params=pltpu.CompilerParams(
            dimension_semantics=("parallel", "parallel"),
            vmem_limit_bytes=vmem_limit),
        cost_estimate=cost,
    )(src, mask_bias, prep["in_w_t"], prep["in_b"], prep["out_w_t"], prep["out_b"],
      prep["ln1_g"], prep["ln1_b"], prep["w1_t"], prep["b1"], prep["w2_t"], prep["b2"],
      prep["ln2_g"], prep["ln2_b"])


# ----------------------------------------------------------------------------
# Pure-JAX reference (mirrors the PyTorch forward in eval mode)
# ----------------------------------------------------------------------------
def _reference(src, params, *, nhead, window_size):
    B, S, D = src.shape
    hd = D // nhead
    eps = 1e-5
    outs = []
    for i in range(0, S, window_size):
        x = src[:, i:i + window_size, :].astype(jnp.float32)          # (B, W, D)
        qkv = jnp.einsum("bwd,ed->bwe", x, params["in_w"]) + params["in_b"]
        q, k, v = qkv[..., :D], qkv[..., D:2 * D], qkv[..., 2 * D:]
        q = q.reshape(B, -1, nhead, hd).transpose(0, 2, 1, 3) / (hd ** 0.5)
        k = k.reshape(B, -1, nhead, hd).transpose(0, 2, 1, 3)
        v = v.reshape(B, -1, nhead, hd).transpose(0, 2, 1, 3)
        s = jnp.einsum("bhqd,bhkd->bhqk", q, k)
        p = jax.nn.softmax(s, axis=-1)
        o = jnp.einsum("bhqk,bhkd->bhqd", p, v).transpose(0, 2, 1, 3).reshape(B, -1, D)
        o = jnp.einsum("bwd,ed->bwe", o, params["out_w"]) + params["out_b"]
        outs.append(o)
    attn = jnp.concatenate(outs, axis=1)

    def ln(h, g, b):
        m = jnp.mean(h, axis=-1, keepdims=True)
        v = jnp.mean((h - m) ** 2, axis=-1, keepdims=True)
        return (h - m) * jax.lax.rsqrt(v + eps) * g + b

    h = ln(src.astype(jnp.float32) + attn, params["ln1_g"], params["ln1_b"])
    ff = jnp.maximum(jnp.einsum("bsd,fd->bsf", h, params["w1"]) + params["b1"], 0.0)
    ff = jnp.einsum("bsf,df->bsd", ff, params["w2"]) + params["b2"]
    return ln(h + ff, params["ln2_g"], params["ln2_b"])


if __name__ == "__main__":
    d_model, nhead, window_size, dim_ff = 32, 4, 4, 64

    key = jax.random.PRNGKey(0)
    ks = jax.random.split(key, 11)
    params = {
        "in_w": 0.1 * jax.random.normal(ks[0], (3 * d_model, d_model), jnp.float32),
        "in_b": 0.05 * jax.random.normal(ks[1], (3 * d_model,), jnp.float32),
        "out_w": 0.1 * jax.random.normal(ks[2], (d_model, d_model), jnp.float32),
        "out_b": 0.05 * jax.random.normal(ks[3], (d_model,), jnp.float32),
        "w1": 0.1 * jax.random.normal(ks[4], (dim_ff, d_model), jnp.float32),
        "b1": 0.05 * jax.random.normal(ks[5], (dim_ff,), jnp.float32),
        "w2": 0.1 * jax.random.normal(ks[6], (d_model, dim_ff), jnp.float32),
        "b2": 0.05 * jax.random.normal(ks[7], (d_model,), jnp.float32),
        "ln1_g": jnp.ones((d_model,), jnp.float32),   # PyTorch LayerNorm default init
        "ln1_b": jnp.zeros((d_model,), jnp.float32),
        "ln2_g": jnp.ones((d_model,), jnp.float32),
        "ln2_b": jnp.zeros((d_model,), jnp.float32),
    }
    prep = prepare_params(params)   # one-time host-side weight preprocessing

    tol = dict(atol=2e-3, rtol=2e-3)   # approx=True softmax reciprocal

    # Case 1: small shape consistent with the module (batch=2, seq=8, d_model=32);
    # the (8, 8) chunk holds 2 windows -> exercises the block-diagonal mask.
    src = jax.random.normal(ks[8], (2, 8, d_model), jnp.float32)
    out = jax.block_until_ready(
        multi_attn_layer(src, prep, nhead=nhead, window_size=window_size))
    ref = _reference(src, params, nhead=nhead, window_size=window_size)
    assert out.shape == src.shape
    assert jnp.allclose(out, ref, **tol), "mismatch vs reference (case 1)"

    # Case 2: longer sequence with a small seq_tile -> multiple grid steps per batch.
    src2 = jax.random.normal(ks[9], (2, 16, d_model), jnp.float32)
    out2 = jax.block_until_ready(
        multi_attn_layer(src2, prep, nhead=nhead, window_size=window_size, seq_tile=8))
    ref2 = _reference(src2, params, nhead=nhead, window_size=window_size)
    assert jnp.allclose(out2, ref2, **tol), "mismatch vs reference (case 2)"

    # Case 3: long sequence, window=8 -> tile T=256 split into 2 chunks of C=128,
    # exercising the batched chunked-attention path (n > 1).
    src3 = jax.random.normal(ks[10], (2, 256, d_model), jnp.float32)
    out3 = jax.block_until_ready(
        multi_attn_layer(src3, prep, nhead=nhead, window_size=8))
    ref3 = _reference(src3, params, nhead=nhead, window_size=8)
    assert jnp.allclose(out3, ref3, **tol), "mismatch vs reference (case 3)"

    print("KERNEL_OK")
</pallas_src>

<mosaic_0001>
module attributes {stable_mosaic.version = 11 : i64} {
  func.func @_multi_attn_layer_kernel(%arg0: i32, %arg1: i32, %arg2: memref<1x8x32xf32, #tpu.memory_space<vmem>>, %arg3: memref<8x8xf32, #tpu.memory_space<vmem>>, %arg4: memref<32x96xf32, #tpu.memory_space<vmem>>, %arg5: memref<1x96xf32, #tpu.memory_space<vmem>>, %arg6: memref<32x32xf32, #tpu.memory_space<vmem>>, %arg7: memref<1x32xf32, #tpu.memory_space<vmem>>, %arg8: memref<1x32xf32, #tpu.memory_space<vmem>>, %arg9: memref<1x32xf32, #tpu.memory_space<vmem>>, %arg10: memref<32x64xf32, #tpu.memory_space<vmem>>, %arg11: memref<1x64xf32, #tpu.memory_space<vmem>>, %arg12: memref<64x32xf32, #tpu.memory_space<vmem>>, %arg13: memref<1x32xf32, #tpu.memory_space<vmem>>, %arg14: memref<1x32xf32, #tpu.memory_space<vmem>>, %arg15: memref<1x32xf32, #tpu.memory_space<vmem>>, %arg16: memref<1x8x32xf32, #tpu.memory_space<vmem>>, %arg17: memref<8x32xf32, #tpu.memory_space<vmem>>) attributes {dimension_semantics = [#tpu.dimension_semantics<parallel>, #tpu.dimension_semantics<parallel>], iteration_bounds = array<i64: 2, 1>, scalar_prefetch = 0 : i64, scratch_operands = 1 : i64, tpu.core_type = #tpu.core_type<tc>, window_params = [{transform_indices = @transform_0, window_bounds = array<i64: 1, 8, 32>}, {pipeline_mode = #tpu.pipeline_mode<synchronous>, transform_indices = @transform_1, window_bounds = array<i64: 8, 8>}, {pipeline_mode = #tpu.pipeline_mode<synchronous>, transform_indices = @transform_2, window_bounds = array<i64: 32, 96>}, {pipeline_mode = #tpu.pipeline_mode<synchronous>, transform_indices = @transform_3, window_bounds = array<i64: 1, 96>}, {pipeline_mode = #tpu.pipeline_mode<synchronous>, transform_indices = @transform_4, window_bounds = array<i64: 32, 32>}, {pipeline_mode = #tpu.pipeline_mode<synchronous>, transform_indices = @transform_5, window_bounds = array<i64: 1, 32>}, {pipeline_mode = #tpu.pipeline_mode<synchronous>, transform_indices = @transform_6, window_bounds = array<i64: 1, 32>}, {pipeline_mode = #tpu.pipeline_mode<synchronous>, transform_indices = @transform_7, window_bounds = array<i64: 1, 32>}, {pipeline_mode = #tpu.pipeline_mode<synchronous>, transform_indices = @transform_8, window_bounds = array<i64: 32, 64>}, {pipeline_mode = #tpu.pipeline_mode<synchronous>, transform_indices = @transform_9, window_bounds = array<i64: 1, 64>}, {pipeline_mode = #tpu.pipeline_mode<synchronous>, transform_indices = @transform_10, window_bounds = array<i64: 64, 32>}, {pipeline_mode = #tpu.pipeline_mode<synchronous>, transform_indices = @transform_11, window_bounds = array<i64: 1, 32>}, {pipeline_mode = #tpu.pipeline_mode<synchronous>, transform_indices = @transform_12, window_bounds = array<i64: 1, 32>}, {pipeline_mode = #tpu.pipeline_mode<synchronous>, transform_indices = @transform_13, window_bounds = array<i64: 1, 32>}, {transform_indices = @transform_14, window_bounds = array<i64: 1, 8, 32>}]} {
    %c0 = arith.constant 0 : index
    %c0_0 = arith.constant 0 : index
    %c0_1 = arith.constant 0 : index
    %0 = vector.load %arg2[%c0, %c0_0, %c0_1] : memref<1x8x32xf32, #tpu.memory_space<vmem>>, vector<1x8x32xf32>
    %1 = vector.shape_cast %0 : vector<1x8x32xf32> to vector<8x32xf32>
    %c0_2 = arith.constant 0 : index
    %c0_3 = arith.constant 0 : index
    %2 = vector.load %arg4[%c0_2, %c0_3] : memref<32x96xf32, #tpu.memory_space<vmem>>, vector<32x96xf32>
    %cst = arith.constant dense<0.000000e+00> : vector<8x96xf32>
    %3 = tpu.matmul %1, %2, %cst {dimension_numbers = #tpu.dot_dimension_numbers<[1], [0], [0], [1], [0, 0, 1, 1], [], []>} : vector<8x32xf32>, vector<32x96xf32>, vector<8x96xf32> -> vector<8x96xf32>
    %c0_4 = arith.constant 0 : index
    %c0_5 = arith.constant 0 : index
    %4 = vector.load %arg5[%c0_4, %c0_5] : memref<1x96xf32, #tpu.memory_space<vmem>>, vector<1x96xf32>
    %5 = vector.broadcast %4 : vector<1x96xf32> to vector<8x96xf32>
    %6 = arith.addf %3, %5 : vector<8x96xf32>
    %c0_6 = arith.constant 0 : index
    %c0_7 = arith.constant 0 : index
    %7 = vector.load %arg3[%c0_6, %c0_7] : memref<8x8xf32, #tpu.memory_space<vmem>>, vector<8x8xf32>
    %8 = vector.extract_strided_slice %6 {offsets = [0, 0], sizes = [8, 8], strides = [1, 1]} : vector<8x96xf32> to vector<8x8xf32>
    %9 = vector.shape_cast %8 : vector<8x8xf32> to vector<1x8x8xf32>
    %10 = vector.extract_strided_slice %6 {offsets = [0, 32], sizes = [8, 8], strides = [1, 1]} : vector<8x96xf32> to vector<8x8xf32>
    %11 = vector.shape_cast %10 : vector<8x8xf32> to vector<1x8x8xf32>
    %12 = vector.extract_strided_slice %6 {offsets = [0, 64], sizes = [8, 8], strides = [1, 1]} : vector<8x96xf32> to vector<8x8xf32>
    %13 = vector.shape_cast %12 : vector<8x8xf32> to vector<1x8x8xf32>
    "tpu.trace_start"() <{level = 10 : i32, message = "nqd,nkd->nqk"}> : () -> ()
    %cst_8 = arith.constant dense<0.000000e+00> : vector<1x8x8xf32>
    %14 = tpu.matmul %9, %11, %cst_8 {dimension_numbers = #tpu.dot_dimension_numbers<[2], [2], [1], [1], [0, 0, 0, 1, 1, 1], [0], [0]>} : vector<1x8x8xf32>, vector<1x8x8xf32>, vector<1x8x8xf32> -> vector<1x8x8xf32>
    "tpu.trace_stop"() : () -> ()
    %cst_9 = arith.constant 0.353553385 : f32
    %15 = vector.broadcast %cst_9 : f32 to vector<1x8x8xf32>
    %16 = arith.mulf %14, %15 : vector<1x8x8xf32>
    %17 = vector.shape_cast %7 : vector<8x8xf32> to vector<1x8x8xf32>
    %18 = arith.addf %16, %17 : vector<1x8x8xf32>
    %cst_10 = arith.constant dense<0xFF800000> : vector<1x8xf32>
    %19 = vector.multi_reduction <maximumf>, %18, %cst_10 [2] : vector<1x8x8xf32> to vector<1x8xf32>
    %20 = vector.shape_cast %19 : vector<1x8xf32> to vector<1x8x1xf32>
    %21 = vector.broadcast %20 : vector<1x8x1xf32> to vector<1x8x8xf32>
    %22 = arith.subf %18, %21 : vector<1x8x8xf32>
    %23 = math.exp %22 : vector<1x8x8xf32>
    %cst_11 = arith.constant dense<0.000000e+00> : vector<1x8xf32>
    %24 = vector.multi_reduction <add>, %23, %cst_11 [2] : vector<1x8x8xf32> to vector<1x8xf32>
    %25 = vector.shape_cast %24 : vector<1x8xf32> to vector<1x8x1xf32>
    "tpu.trace_start"() <{level = 10 : i32, message = "nqk,nkd->nqd"}> : () -> ()
    %cst_12 = arith.constant dense<0.000000e+00> : vector<1x8x8xf32>
    %26 = tpu.matmul %23, %13, %cst_12 {dimension_numbers = #tpu.dot_dimension_numbers<[2], [1], [1], [2], [0, 0, 0, 1, 1, 2], [0], [0]>} : vector<1x8x8xf32>, vector<1x8x8xf32>, vector<1x8x8xf32> -> vector<1x8x8xf32>
    "tpu.trace_stop"() : () -> ()
    %27 = tpu.reciprocal %25 {approx = true} : vector<1x8x1xf32> -> vector<1x8x1xf32>
    %28 = vector.broadcast %27 : vector<1x8x1xf32> to vector<1x8x8xf32>
    %29 = arith.mulf %26, %28 : vector<1x8x8xf32>
    %30 = vector.shape_cast %29 : vector<1x8x8xf32> to vector<8x8xf32>
    %c0_13 = arith.constant 0 : index
    %c0_14 = arith.constant 0 : index
    %31 = vector.load %arg17[%c0_13, %c0_14] : memref<8x32xf32, #tpu.memory_space<vmem>>, vector<8x8xf32>
    tpu.vector_store %arg17[%c0_13, %c0_14], %30 {strides = array<i32>} : memref<8x32xf32, #tpu.memory_space<vmem>>, vector<8x8xf32>,
    %32 = vector.extract_strided_slice %6 {offsets = [0, 8], sizes = [8, 8], strides = [1, 1]} : vector<8x96xf32> to vector<8x8xf32>
    %33 = vector.shape_cast %32 : vector<8x8xf32> to vector<1x8x8xf32>
    %34 = vector.extract_strided_slice %6 {offsets = [0, 40], sizes = [8, 8], strides = [1, 1]} : vector<8x96xf32> to vector<8x8xf32>
    %35 = vector.shape_cast %34 : vector<8x8xf32> to vector<1x8x8xf32>
    %36 = vector.extract_strided_slice %6 {offsets = [0, 72], sizes = [8, 8], strides = [1, 1]} : vector<8x96xf32> to vector<8x8xf32>
    %37 = vector.shape_cast %36 : vector<8x8xf32> to vector<1x8x8xf32>
    "tpu.trace_start"() <{level = 10 : i32, message = "nqd,nkd->nqk"}> : () -> ()
    %cst_15 = arith.constant dense<0.000000e+00> : vector<1x8x8xf32>
    %38 = tpu.matmul %33, %35, %cst_15 {dimension_numbers = #tpu.dot_dimension_numbers<[2], [2], [1], [1], [0, 0, 0, 1, 1, 1], [0], [0]>} : vector<1x8x8xf32>, vector<1x8x8xf32>, vector<1x8x8xf32> -> vector<1x8x8xf32>
    "tpu.trace_stop"() : () -> ()
    %cst_16 = arith.constant 0.353553385 : f32
    %39 = vector.broadcast %cst_16 : f32 to vector<1x8x8xf32>
    %40 = arith.mulf %38, %39 : vector<1x8x8xf32>
    %41 = vector.shape_cast %7 : vector<8x8xf32> to vector<1x8x8xf32>
    %42 = arith.addf %40, %41 : vector<1x8x8xf32>
    %cst_17 = arith.constant dense<0xFF800000> : vector<1x8xf32>
    %43 = vector.multi_reduction <maximumf>, %42, %cst_17 [2] : vector<1x8x8xf32> to vector<1x8xf32>
    %44 = vector.shape_cast %43 : vector<1x8xf32> to vector<1x8x1xf32>
    %45 = vector.broadcast %44 : vector<1x8x1xf32> to vector<1x8x8xf32>
    %46 = arith.subf %42, %45 : vector<1x8x8xf32>
    %47 = math.exp %46 : vector<1x8x8xf32>
    %cst_18 = arith.constant dense<0.000000e+00> : vector<1x8xf32>
    %48 = vector.multi_reduction <add>, %47, %cst_18 [2] : vector<1x8x8xf32> to vector<1x8xf32>
    %49 = vector.shape_cast %48 : vector<1x8xf32> to vector<1x8x1xf32>
    "tpu.trace_start"() <{level = 10 : i32, message = "nqk,nkd->nqd"}> : () -> ()
    %cst_19 = arith.constant dense<0.000000e+00> : vector<1x8x8xf32>
    %50 = tpu.matmul %47, %37, %cst_19 {dimension_numbers = #tpu.dot_dimension_numbers<[2], [1], [1], [2], [0, 0, 0, 1, 1, 2], [0], [0]>} : vector<1x8x8xf32>, vector<1x8x8xf32>, vector<1x8x8xf32> -> vector<1x8x8xf32>
    "tpu.trace_stop"() : () -> ()
    %51 = tpu.reciprocal %49 {approx = true} : vector<1x8x1xf32> -> vector<1x8x1xf32>
    %52 = vector.broadcast %51 : vector<1x8x1xf32> to vector<1x8x8xf32>
    %53 = arith.mulf %50, %52 : vector<1x8x8xf32>
    %54 = vector.shape_cast %53 : vector<1x8x8xf32> to vector<8x8xf32>
    %c0_20 = arith.constant 0 : index
    %c8 = arith.constant 8 : index
    %55 = vector.load %arg17[%c0_20, %c8] : memref<8x32xf32, #tpu.memory_space<vmem>>, vector<8x8xf32>
    tpu.vector_store %arg17[%c0_20, %c8], %54 {strides = array<i32>} : memref<8x32xf32, #tpu.memory_space<vmem>>, vector<8x8xf32>,
    %56 = vector.extract_strided_slice %6 {offsets = [0, 16], sizes = [8, 8], strides = [1, 1]} : vector<8x96xf32> to vector<8x8xf32>
    %57 = vector.shape_cast %56 : vector<8x8xf32> to vector<1x8x8xf32>
    %58 = vector.extract_strided_slice %6 {offsets = [0, 48], sizes = [8, 8], strides = [1, 1]} : vector<8x96xf32> to vector<8x8xf32>
    %59 = vector.shape_cast %58 : vector<8x8xf32> to vector<1x8x8xf32>
    %60 = vector.extract_strided_slice %6 {offsets = [0, 80], sizes = [8, 8], strides = [1, 1]} : vector<8x96xf32> to vector<8x8xf32>
    %61 = vector.shape_cast %60 : vector<8x8xf32> to vector<1x8x8xf32>
    "tpu.trace_start"() <{level = 10 : i32, message = "nqd,nkd->nqk"}> : () -> ()
    %cst_21 = arith.constant dense<0.000000e+00> : vector<1x8x8xf32>
    %62 = tpu.matmul %57, %59, %cst_21 {dimension_numbers = #tpu.dot_dimension_numbers<[2], [2], [1], [1], [0, 0, 0, 1, 1, 1], [0], [0]>} : vector<1x8x8xf32>, vector<1x8x8xf32>, vector<1x8x8xf32> -> vector<1x8x8xf32>
    "tpu.trace_stop"() : () -> ()
    %cst_22 = arith.constant 0.353553385 : f32
    %63 = vector.broadcast %cst_22 : f32 to vector<1x8x8xf32>
    %64 = arith.mulf %62, %63 : vector<1x8x8xf32>
    %65 = vector.shape_cast %7 : vector<8x8xf32> to vector<1x8x8xf32>
    %66 = arith.addf %64, %65 : vector<1x8x8xf32>
    %cst_23 = arith.constant dense<0xFF800000> : vector<1x8xf32>
    %67 = vector.multi_reduction <maximumf>, %66, %cst_23 [2] : vector<1x8x8xf32> to vector<1x8xf32>
    %68 = vector.shape_cast %67 : vector<1x8xf32> to vector<1x8x1xf32>
    %69 = vector.broadcast %68 : vector<1x8x1xf32> to vector<1x8x8xf32>
    %70 = arith.subf %66, %69 : vector<1x8x8xf32>
    %71 = math.exp %70 : vector<1x8x8xf32>
    %cst_24 = arith.constant dense<0.000000e+00> : vector<1x8xf32>
    %72 = vector.multi_reduction <add>, %71, %cst_24 [2] : vector<1x8x8xf32> to vector<1x8xf32>
    %73 = vector.shape_cast %72 : vector<1x8xf32> to vector<1x8x1xf32>
    "tpu.trace_start"() <{level = 10 : i32, message = "nqk,nkd->nqd"}> : () -> ()
    %cst_25 = arith.constant dense<0.000000e+00> : vector<1x8x8xf32>
    %74 = tpu.matmul %71, %61, %cst_25 {dimension_numbers = #tpu.dot_dimension_numbers<[2], [1], [1], [2], [0, 0, 0, 1, 1, 2], [0], [0]>} : vector<1x8x8xf32>, vector<1x8x8xf32>, vector<1x8x8xf32> -> vector<1x8x8xf32>
    "tpu.trace_stop"() : () -> ()
    %75 = tpu.reciprocal %73 {approx = true} : vector<1x8x1xf32> -> vector<1x8x1xf32>
    %76 = vector.broadcast %75 : vector<1x8x1xf32> to vector<1x8x8xf32>
    %77 = arith.mulf %74, %76 : vector<1x8x8xf32>
    %78 = vector.shape_cast %77 : vector<1x8x8xf32> to vector<8x8xf32>
    %c0_26 = arith.constant 0 : index
    %c16 = arith.constant 16 : index
    %79 = vector.load %arg17[%c0_26, %c16] : memref<8x32xf32, #tpu.memory_space<vmem>>, vector<8x8xf32>
    tpu.vector_store %arg17[%c0_26, %c16], %78 {strides = array<i32>} : memref<8x32xf32, #tpu.memory_space<vmem>>, vector<8x8xf32>,
    %80 = vector.extract_strided_slice %6 {offsets = [0, 24], sizes = [8, 8], strides = [1, 1]} : vector<8x96xf32> to vector<8x8xf32>
    %81 = vector.shape_cast %80 : vector<8x8xf32> to vector<1x8x8xf32>
    %82 = vector.extract_strided_slice %6 {offsets = [0, 56], sizes = [8, 8], strides = [1, 1]} : vector<8x96xf32> to vector<8x8xf32>
    %83 = vector.shape_cast %82 : vector<8x8xf32> to vector<1x8x8xf32>
    %84 = vector.extract_strided_slice %6 {offsets = [0, 88], sizes = [8, 8], strides = [1, 1]} : vector<8x96xf32> to vector<8x8xf32>
    %85 = vector.shape_cast %84 : vector<8x8xf32> to vector<1x8x8xf32>
    "tpu.trace_start"() <{level = 10 : i32, message = "nqd,nkd->nqk"}> : () -> ()
    %cst_27 = arith.constant dense<0.000000e+00> : vector<1x8x8xf32>
    %86 = tpu.matmul %81, %83, %cst_27 {dimension_numbers = #tpu.dot_dimension_numbers<[2], [2], [1], [1], [0, 0, 0, 1, 1, 1], [0], [0]>} : vector<1x8x8xf32>, vector<1x8x8xf32>, vector<1x8x8xf32> -> vector<1x8x8xf32>
    "tpu.trace_stop"() : () -> ()
    %cst_28 = arith.constant 0.353553385 : f32
    %87 = vector.broadcast %cst_28 : f32 to vector<1x8x8xf32>
    %88 = arith.mulf %86, %87 : vector<1x8x8xf32>
    %89 = vector.shape_cast %7 : vector<8x8xf32> to vector<1x8x8xf32>
    %90 = arith.addf %88, %89 : vector<1x8x8xf32>
    %cst_29 = arith.constant dense<0xFF800000> : vector<1x8xf32>
    %91 = vector.multi_reduction <maximumf>, %90, %cst_29 [2] : vector<1x8x8xf32> to vector<1x8xf32>
    %92 = vector.shape_cast %91 : vector<1x8xf32> to vector<1x8x1xf32>
    %93 = vector.broadcast %92 : vector<1x8x1xf32> to vector<1x8x8xf32>
    %94 = arith.subf %90, %93 : vector<1x8x8xf32>
    %95 = math.exp %94 : vector<1x8x8xf32>
    %cst_30 = arith.constant dense<0.000000e+00> : vector<1x8xf32>
    %96 = vector.multi_reduction <add>, %95, %cst_30 [2] : vector<1x8x8xf32> to vector<1x8xf32>
    %97 = vector.shape_cast %96 : vector<1x8xf32> to vector<1x8x1xf32>
    "tpu.trace_start"() <{level = 10 : i32, message = "nqk,nkd->nqd"}> : () -> ()
    %cst_31 = arith.constant dense<0.000000e+00> : vector<1x8x8xf32>
    %98 = tpu.matmul %95, %85, %cst_31 {dimension_numbers = #tpu.dot_dimension_numbers<[2], [1], [1], [2], [0, 0, 0, 1, 1, 2], [0], [0]>} : vector<1x8x8xf32>, vector<1x8x8xf32>, vector<1x8x8xf32> -> vector<1x8x8xf32>
    "tpu.trace_stop"() : () -> ()
    %99 = tpu.reciprocal %97 {approx = true} : vector<1x8x1xf32> -> vector<1x8x1xf32>
    %100 = vector.broadcast %99 : vector<1x8x1xf32> to vector<1x8x8xf32>
    %101 = arith.mulf %98, %100 : vector<1x8x8xf32>
    %102 = vector.shape_cast %101 : vector<1x8x8xf32> to vector<8x8xf32>
    %c0_32 = arith.constant 0 : index
    %c24 = arith.constant 24 : index
    %103 = vector.load %arg17[%c0_32, %c24] : memref<8x32xf32, #tpu.memory_space<vmem>>, vector<8x8xf32>
    tpu.vector_store %arg17[%c0_32, %c24], %102 {strides = array<i32>} : memref<8x32xf32, #tpu.memory_space<vmem>>, vector<8x8xf32>,
    %c0_33 = arith.constant 0 : index
    %c0_34 = arith.constant 0 : index
    %104 = vector.load %arg17[%c0_33, %c0_34] : memref<8x32xf32, #tpu.memory_space<vmem>>, vector<8x32xf32>
    %c0_35 = arith.constant 0 : index
    %c0_36 = arith.constant 0 : index
    %105 = vector.load %arg6[%c0_35, %c0_36] : memref<32x32xf32, #tpu.memory_space<vmem>>, vector<32x32xf32>
    %cst_37 = arith.constant dense<0.000000e+00> : vector<8x32xf32>
    %106 = tpu.matmul %104, %105, %cst_37 {dimension_numbers = #tpu.dot_dimension_numbers<[1], [0], [0], [1], [0, 0, 1, 1], [], []>} : vector<8x32xf32>, vector<32x32xf32>, vector<8x32xf32> -> vector<8x32xf32>
    %c0_38 = arith.constant 0 : index
    %c0_39 = arith.constant 0 : index
    %107 = vector.load %arg7[%c0_38, %c0_39] : memref<1x32xf32, #tpu.memory_space<vmem>>, vector<1x32xf32>
    %108 = vector.broadcast %107 : vector<1x32xf32> to vector<8x32xf32>
    %109 = arith.addf %106, %108 : vector<8x32xf32>
    %110 = arith.addf %1, %109 : vector<8x32xf32>
    %cst_40 = arith.constant dense<0.000000e+00> : vector<8xf32>
    %111 = vector.multi_reduction <add>, %110, %cst_40 [1] : vector<8x32xf32> to vector<8xf32>
    %112 = vector.shape_cast %111 : vector<8xf32> to vector<8x1xf32>
    %cst_41 = arith.constant 3.200000e+01 : f32
    %113 = vector.broadcast %cst_41 : f32 to vector<8x1xf32>
    %114 = arith.divf %112, %113 : vector<8x1xf32>
    %115 = vector.broadcast %114 : vector<8x1xf32> to vector<8x32xf32>
    %116 = arith.subf %110, %115 : vector<8x32xf32>
    %117 = arith.mulf %116, %116 : vector<8x32xf32>
    %cst_42 = arith.constant dense<0.000000e+00> : vector<8xf32>
    %118 = vector.multi_reduction <add>, %117, %cst_42 [1] : vector<8x32xf32> to vector<8xf32>
    %119 = vector.shape_cast %118 : vector<8xf32> to vector<8x1xf32>
    %cst_43 = arith.constant 3.200000e+01 : f32
    %120 = vector.broadcast %cst_43 : f32 to vector<8x1xf32>
    %121 = arith.divf %119, %120 : vector<8x1xf32>
    %122 = vector.broadcast %114 : vector<8x1xf32> to vector<8x32xf32>
    %123 = arith.subf %110, %122 : vector<8x32xf32>
    %cst_44 = arith.constant 9.99999974E-6 : f32
    %124 = vector.broadcast %cst_44 : f32 to vector<8x1xf32>
    %125 = arith.addf %121, %124 : vector<8x1xf32>
    %126 = math.rsqrt %125 : vector<8x1xf32>
    %127 = vector.broadcast %126 : vector<8x1xf32> to vector<8x32xf32>
    %128 = arith.mulf %123, %127 : vector<8x32xf32>
    %c0_45 = arith.constant 0 : index
    %c0_46 = arith.constant 0 : index
    %129 = vector.load %arg8[%c0_45, %c0_46] : memref<1x32xf32, #tpu.memory_space<vmem>>, vector<1x32xf32>
    %130 = vector.broadcast %129 : vector<1x32xf32> to vector<8x32xf32>
    %131 = arith.mulf %128, %130 : vector<8x32xf32>
    %c0_47 = arith.constant 0 : index
    %c0_48 = arith.constant 0 : index
    %132 = vector.load %arg9[%c0_47, %c0_48] : memref<1x32xf32, #tpu.memory_space<vmem>>, vector<1x32xf32>
    %133 = vector.broadcast %132 : vector<1x32xf32> to vector<8x32xf32>
    %134 = arith.addf %131, %133 : vector<8x32xf32>
    %c0_49 = arith.constant 0 : index
    %c0_50 = arith.constant 0 : index
    %135 = vector.load %arg10[%c0_49, %c0_50] : memref<32x64xf32, #tpu.memory_space<vmem>>, vector<32x64xf32>
    %cst_51 = arith.constant dense<0.000000e+00> : vector<8x64xf32>
    %136 = tpu.matmul %134, %135, %cst_51 {dimension_numbers = #tpu.dot_dimension_numbers<[1], [0], [0], [1], [0, 0, 1, 1], [], []>} : vector<8x32xf32>, vector<32x64xf32>, vector<8x64xf32> -> vector<8x64xf32>
    %c0_52 = arith.constant 0 : index
    %c0_53 = arith.constant 0 : index
    %137 = vector.load %arg11[%c0_52, %c0_53] : memref<1x64xf32, #tpu.memory_space<vmem>>, vector<1x64xf32>
    %138 = vector.broadcast %137 : vector<1x64xf32> to vector<8x64xf32>
    %139 = arith.addf %136, %138 : vector<8x64xf32>
    %cst_54 = arith.constant 0.000000e+00 : f32
    %140 = vector.broadcast %cst_54 : f32 to vector<8x64xf32>
    %141 = arith.maximumf %139, %140 : vector<8x64xf32>
    %c0_55 = arith.constant 0 : index
    %c0_56 = arith.constant 0 : index
    %142 = vector.load %arg12[%c0_55, %c0_56] : memref<64x32xf32, #tpu.memory_space<vmem>>, vector<64x32xf32>
    %cst_57 = arith.constant dense<0.000000e+00> : vector<8x32xf32>
    %143 = tpu.matmul %141, %142, %cst_57 {dimension_numbers = #tpu.dot_dimension_numbers<[1], [0], [0], [1], [0, 0, 1, 1], [], []>} : vector<8x64xf32>, vector<64x32xf32>, vector<8x32xf32> -> vector<8x32xf32>
    %c0_58 = arith.constant 0 : index
    %c0_59 = arith.constant 0 : index
    %144 = vector.load %arg13[%c0_58, %c0_59] : memref<1x32xf32, #tpu.memory_space<vmem>>, vector<1x32xf32>
    %145 = vector.broadcast %144 : vector<1x32xf32> to vector<8x32xf32>
    %146 = arith.addf %143, %145 : vector<8x32xf32>
    %147 = arith.addf %134, %146 : vector<8x32xf32>
    %cst_60 = arith.constant dense<0.000000e+00> : vector<8xf32>
    %148 = vector.multi_reduction <add>, %147, %cst_60 [1] : vector<8x32xf32> to vector<8xf32>
    %149 = vector.shape_cast %148 : vector<8xf32> to vector<8x1xf32>
    %cst_61 = arith.constant 3.200000e+01 : f32
    %150 = vector.broadcast %cst_61 : f32 to vector<8x1xf32>
    %151 = arith.divf %149, %150 : vector<8x1xf32>
    %152 = vector.broadcast %151 : vector<8x1xf32> to vector<8x32xf32>
    %153 = arith.subf %147, %152 : vector<8x32xf32>
    %154 = arith.mulf %153, %153 : vector<8x32xf32>
    %cst_62 = arith.constant dense<0.000000e+00> : vector<8xf32>
    %155 = vector.multi_reduction <add>, %154, %cst_62 [1] : vector<8x32xf32> to vector<8xf32>
    %156 = vector.shape_cast %155 : vector<8xf32> to vector<8x1xf32>
    %cst_63 = arith.constant 3.200000e+01 : f32
    %157 = vector.broadcast %cst_63 : f32 to vector<8x1xf32>
    %158 = arith.divf %156, %157 : vector<8x1xf32>
    %159 = vector.broadcast %151 : vector<8x1xf32> to vector<8x32xf32>
    %160 = arith.subf %147, %159 : vector<8x32xf32>
    %cst_64 = arith.constant 9.99999974E-6 : f32
    %161 = vector.broadcast %cst_64 : f32 to vector<8x1xf32>
    %162 = arith.addf %158, %161 : vector<8x1xf32>
    %163 = math.rsqrt %162 : vector<8x1xf32>
    %164 = vector.broadcast %163 : vector<8x1xf32> to vector<8x32xf32>
    %165 = arith.mulf %160, %164 : vector<8x32xf32>
    %c0_65 = arith.constant 0 : index
    %c0_66 = arith.constant 0 : index
    %166 = vector.load %arg14[%c0_65, %c0_66] : memref<1x32xf32, #tpu.memory_space<vmem>>, vector<1x32xf32>
    %167 = vector.broadcast %166 : vector<1x32xf32> to vector<8x32xf32>
    %168 = arith.mulf %165, %167 : vector<8x32xf32>
    %c0_67 = arith.constant 0 : index
    %c0_68 = arith.constant 0 : index
    %169 = vector.load %arg15[%c0_67, %c0_68] : memref<1x32xf32, #tpu.memory_space<vmem>>, vector<1x32xf32>
    %170 = vector.broadcast %169 : vector<1x32xf32> to vector<8x32xf32>
    %171 = arith.addf %168, %170 : vector<8x32xf32>
    %c0_69 = arith.constant 0 : index
    %c0_70 = arith.constant 0 : index
    %c0_71 = arith.constant 0 : index
    %172 = vector.load %arg16[%c0_69, %c0_70, %c0_71] : memref<1x8x32xf32, #tpu.memory_space<vmem>>, vector<1x8x32xf32>
    %173 = vector.shape_cast %172 : vector<1x8x32xf32> to vector<8x32xf32>
    %174 = vector.shape_cast %171 : vector<8x32xf32> to vector<1x8x32xf32>
    tpu.vector_store %arg16[%c0_69, %c0_70, %c0_71], %174 {strides = array<i32>} : memref<1x8x32xf32, #tpu.memory_space<vmem>>, vector<1x8x32xf32>,
    return
  }
  func.func @transform_0(%arg0: i32, %arg1: i32) -> (i32, i32, i32) {
    %c0_i32 = arith.constant 0 : i32
    %c0_i32_0 = arith.constant 0 : i32
    return %arg0, %arg1, %c0_i32 : i32, i32, i32
  }
  func.func @transform_1(%arg0: i32, %arg1: i32) -> (i32, i32) {
    %c0_i32 = arith.constant 0 : i32
    %c0_i32_0 = arith.constant 0 : i32
    %c0_i32_1 = arith.constant 0 : i32
    return %c0_i32, %c0_i32_0 : i32, i32
  }
  func.func @transform_2(%arg0: i32, %arg1: i32) -> (i32, i32) {
    %c0_i32 = arith.constant 0 : i32
    %c0_i32_0 = arith.constant 0 : i32
    %c0_i32_1 = arith.constant 0 : i32
    return %c0_i32, %c0_i32_0 : i32, i32
  }
  func.func @transform_3(%arg0: i32, %arg1: i32) -> (i32, i32) {
    %c0_i32 = arith.constant 0 : i32
    %c0_i32_0 = arith.constant 0 : i32
    %c0_i32_1 = arith.constant 0 : i32
    return %c0_i32, %c0_i32_0 : i32, i32
  }
  func.func @transform_4(%arg0: i32, %arg1: i32) -> (i32, i32) {
    %c0_i32 = arith.constant 0 : i32
    %c0_i32_0 = arith.constant 0 : i32
    %c0_i32_1 = arith.constant 0 : i32
    return %c0_i32, %c0_i32_0 : i32, i32
  }
  func.func @transform_5(%arg0: i32, %arg1: i32) -> (i32, i32) {
    %c0_i32 = arith.constant 0 : i32
    %c0_i32_0 = arith.constant 0 : i32
    %c0_i32_1 = arith.constant 0 : i32
    return %c0_i32, %c0_i32_0 : i32, i32
  }
  func.func @transform_6(%arg0: i32, %arg1: i32) -> (i32, i32) {
    %c0_i32 = arith.constant 0 : i32
    %c0_i32_0 = arith.constant 0 : i32
    %c0_i32_1 = arith.constant 0 : i32
    return %c0_i32, %c0_i32_0 : i32, i32
  }
  func.func @transform_7(%arg0: i32, %arg1: i32) -> (i32, i32) {
    %c0_i32 = arith.constant 0 : i32
    %c0_i32_0 = arith.constant 0 : i32
    %c0_i32_1 = arith.constant 0 : i32
    return %c0_i32, %c0_i32_0 : i32, i32
  }
  func.func @transform_8(%arg0: i32, %arg1: i32) -> (i32, i32) {
    %c0_i32 = arith.constant 0 : i32
    %c0_i32_0 = arith.constant 0 : i32
    %c0_i32_1 = arith.constant 0 : i32
    return %c0_i32, %c0_i32_0 : i32, i32
  }
  func.func @transform_9(%arg0: i32, %arg1: i32) -> (i32, i32) {
    %c0_i32 = arith.constant 0 : i32
    %c0_i32_0 = arith.constant 0 : i32
    %c0_i32_1 = arith.constant 0 : i32
    return %c0_i32, %c0_i32_0 : i32, i32
  }
  func.func @transform_10(%arg0: i32, %arg1: i32) -> (i32, i32) {
    %c0_i32 = arith.constant 0 : i32
    %c0_i32_0 = arith.constant 0 : i32
    %c0_i32_1 = arith.constant 0 : i32
    return %c0_i32, %c0_i32_0 : i32, i32
  }
  func.func @transform_11(%arg0: i32, %arg1: i32) -> (i32, i32) {
    %c0_i32 = arith.constant 0 : i32
    %c0_i32_0 = arith.constant 0 : i32
    %c0_i32_1 = arith.constant 0 : i32
    return %c0_i32, %c0_i32_0 : i32, i32
  }
  func.func @transform_12(%arg0: i32, %arg1: i32) -> (i32, i32) {
    %c0_i32 = arith.constant 0 : i32
    %c0_i32_0 = arith.constant 0 : i32
    %c0_i32_1 = arith.constant 0 : i32
    return %c0_i32, %c0_i32_0 : i32, i32
  }
  func.func @transform_13(%arg0: i32, %arg1: i32) -> (i32, i32) {
    %c0_i32 = arith.constant 0 : i32
    %c0_i32_0 = arith.constant 0 : i32
    %c0_i32_1 = arith.constant 0 : i32
    return %c0_i32, %c0_i32_0 : i32, i32
  }
  func.func @transform_14(%arg0: i32, %arg1: i32) -> (i32, i32, i32) {
    %c0_i32 = arith.constant 0 : i32
    %c0_i32_0 = arith.constant 0 : i32
    return %arg0, %arg1, %c0_i32 : i32, i32, i32
  }
}

</mosaic_0001>

<bundles_post_ra>
// kernel: tpu_custom_call.1
= control target key start
LH: loop header
LB: loop body
LE: loop exit
PB: predicated region body
PF: predicated region fallthrough
CT: control target
= control target key end

     0   :  { %s1783_s0 = inlined_call_operand.hbm [shape: f32[2,8,32], index: 0, kind: input, shape index: {}]   ;;  %s1784_s1 = inlined_call_operand.hbm [shape: f32[8,8], index: 1, kind: input, shape index: {}]   ;;  %s1785_s2 = inlined_call_operand.vmem [shape: f32[32,96], index: 2, kind: input, shape index: {}]   ;;  %s1786_s3 = inlined_call_operand.vmem [shape: f32[1,96], index: 3, kind: input, shape index: {}]   ;;  %s1787_s4 = inlined_call_operand.vmem [shape: f32[32,32], index: 4, kind: input, shape index: {}]   ;;  %s1788_s5 = inlined_call_operand.vmem [shape: f32[1,32], index: 5, kind: input, shape index: {}]   ;;  %s1789_s6 = inlined_call_operand.vmem [shape: f32[1,32], index: 6, kind: input, shape index: {}]   ;;  %s1790_s7 = inlined_call_operand.vmem [shape: f32[1,32], index: 7, kind: input, shape index: {}]   ;;  %s1791_s8 = inlined_call_operand.vmem [shape: f32[32,64], index: 8, kind: input, shape index: {}]   ;;  %s1792_s9 = inlined_call_operand.vmem [shape: f32[1,64], index: 9, kind: input, shape index: {}]   ;;  %s1793_s10 = inlined_call_operand.vmem [shape: f32[64,32], index: 10, kind: input, shape index: {}]   ;;  %s1794_s11 = inlined_call_operand.vmem [shape: f32[1,32], index: 11, kind: input, shape index: {}]   ;;  %s1795_s12 = inlined_call_operand.vmem [shape: f32[1,32], index: 12, kind: input, shape index: {}]   ;;  %s1796_s13 = inlined_call_operand.vmem [shape: f32[1,32], index: 13, kind: input, shape index: {}]   ;;  %s1797_s14 = inlined_call_operand.hbm [shape: f32[2,8,32], index: 14, kind: output, shape index: {}]  }
   0x1   :  { %1803 = sst [smem:[#allocation16_spill]] %s1783_s0 }
   0x2   :  { %1804 = sst [smem:[#allocation17_spill]] %s1784_s1 }
   0x3   :  { %1805 = sst [smem:[#allocation18_spill]] %s1792_s9 }
   0x4   :  { %1806 = sst [smem:[#allocation19_spill]] %s1794_s11 }
   0x5   :  { %1807 = sst [smem:[#allocation20_spill]] %s1795_s12 }
   0x6   :  { %1808 = sst [smem:[#allocation21_spill]] %s1796_s13 }
   0x7   :  { %1809 = sst [smem:[#allocation22_spill]] %s1797_s14 }
   0x8   :  { %19 = vsyncpa [#allocation4], 0 }
   0x9   :  { %21 = vsyncpa [#allocation4 + $0x1], 0 }
   0xa   :  { %22 = vsyncpa [#allocation7], 0 }
   0xb   :  { %23 = vsyncpa [#allocation5], 0 }
   0xc   :  { %25 = vsyncpa [#allocation5 + $0x1], 0  ;;  %s1507_s29 = smov 0   ;;  %s1509_s30 = smov 0  }
   0xd   :  { %s1511_s15 = smov 0   ;;  %s1513_s16 = smov 0  }
   0xe   :  { %s1515_s17 = smov 0   ;;  %s1517_s18 = smov 0  }
   0xf LB: > { %1810 = sst [smem:[#allocation12_spill]] %s1394_s29  ;;  %s1119_s19 = sadd.s32 4294967295, %s1414_s18   ;;  %s1414_s18 = sphi %s1517_s18, %s31_s18   ;;  %s1410_s17 = sphi %s1515_s17, %s1837_s17   ;;  %s1406_s16 = sphi %s1513_s16, %s1836_s16   ;;  %s1402_s15 = sphi %s1511_s15, %s1835_s15   ;;  %s1398_s30 = sphi %s1509_s30, %s1834_s30   ;;  %s1394_s29 = sphi %s1507_s29, %s1833_s29  }
  0x10   : > { %1811 = sst [smem:[#allocation13_spill]] %s1406_s16  ;;  %s1120_s20 = sadd.s32 4294967294, %s1414_s18  }
  0x11   : > { %p65_p0 = scmp.ne.s32.totalorder %s1398_s30, %s1394_s29  ;;  %p1541_p1 = scmp.eq.s32.totalorder %s1119_s19, 0 }
  0x12   : > { %p1545_p2 = scmp.eq.s32.totalorder %s1119_s19, 1  ;;  %p370_p3 = scmp.eq.s32.totalorder %s1120_s20, 1 }
  0x13   : > { %p1551_p4 = por %p1541_p1, %p65_p0  ;;  %p1121_p5 = scmp.ge.s32.totalorder %s1414_s18, 1 }
  0x14   : > { %p1556_p6 = por %p370_p3, %p65_p0  ;;  %p377_p7 = scmp.lt.s32.totalorder %s1414_s18, 3 }
  0x15   : > { %s1817_s1 = sld [smem:[#allocation17_spill]]  ;;  %p1123_p9 = scmp.ge.s32.totalorder %s1414_s18, 2 }
  0x16   : > { %s1815_s24 = scalar_select %p1556_p6, 1, 0 }
  0x17   : > { %p1564_p8 = pnand %p1121_p5, %p377_p7  ;;  %s1416_s19 = smov [#allocation6]  }
  0x18   : > { %1816 = sst [smem:[#allocation14_spill]] %s1815_s24  ;;  %s391_s20 = sshll.u32 %s1416_s19, 4  ;;  %s392_s20 = int_to_ptr.vmem [resolvable:$true] %s391_s20 }
  0x19   : > { %p1158_p10 = pneg %p1564_p8  ;;  %s43_s25 = sadd.s32 1, %s1410_s17 }
  0x1a   : > { %p45_p12 = scmp.ge.s32.totalorder %s43_s25, 2  ;;  %s52_s26 = sadd.s32 1, %s1402_s15 }
  0x1b   : > { %s389_s27 = sshll.u32 %s1817_s1, 4  ;;  %p1159_p11 = pnand %p1158_p10, %p1541_p1  ;;  %s390_s27 = int_to_ptr.hbm [resolvable:$true] %s389_s27 }
  0x1c   : > { %p59_p13 = scmp.ne.s32.totalorder %s1402_s15, %s1398_s30  ;;  %p60_p0 = scmp.eq.s32.totalorder %s1414_s18, 0 }
  0x1d   : > { %1161 = dma.hbm_to_vmem [thread:$0]  (!%p1159_p11), %s390_s27, 128, %s392_s20, [#allocation7]  }
  0x1e   : > { %s1839_s25 = smov (%p45_p12, %s43_s25), 0  ;;  %p1580_p3 = por %p60_p0, %p59_p13 }
  0x1f   : > { %p1586_p5 = por %p1545_p2, %p59_p13  ;;  %s47_s24 = ssub.s32 %s1410_s17, %s1839_s25 }
  0x20   : > { %p1171_p7 = scmp.lt.s32.totalorder %s1414_s18, 2  ;;  %p50_p10 = scmp.eq.s32.totalorder %s47_s24, 0 }
  0x21   : > { %s1820_s19 = scalar_select %p1586_p5, 1, 0 }
  0x22   : > { %s438_s27 = sand.u32 1, %s1402_s15   ;;  %s1125_s13 = sshll.u32 %s1410_s17, 3 }
  0x23   : > { %1821 = sst [smem:[#allocation15_spill]] %s1820_s19  ;;  %s1124_s20 = sshll.u32 %s438_s27, 3 }
  0x24   : > { %s1595_s29 = scalar_select %p50_p10, %s1402_s15, %s52_s26  }
  0x25   : > { %s1822_s0 = sld [smem:[#allocation16_spill]]  ;;  %s442_s11 = scalar_lea.vmem [#allocation3], %s1124_s20 }
  0x26   : > { %s451_s9 = sshll.u32 %s442_s11, 4  ;;  %p1163_p2 = pnand %p1171_p7, %p1580_p3  ;;  %s452_s9 = int_to_ptr.vmem [resolvable:$true] %s451_s9 }
  0x27   : > { %s439_s19 = scalar_lea.sflag [#allocation4], %s438_s27  ;;  %s1606_s24 = sand.u32 (!%p1564_p8), 1, %s1398_s30  }
  0x28   : > { %s1127_s12 = sshll.u32 (!%p1564_p8), %s1606_s24, 3 }
  0x29   : > { %460 = sbr.rel (%p1564_p8) target bundleno = 2040 (0x7f8), region = 76  ;;  %s466_s11 = scalar_lea.vmem (!%p1564_p8), [#allocation3], %s1127_s12 }
  0x2b   : > { %s447_s16 = scalar_lea.hbm %s1822_s0, %s1125_s13  ;;  %s463_s13 = scalar_lea.sflag (!%p1564_p8), [#allocation4], %s1606_s24 }
  0x2c   : > { %s449_s22 = sshll.u32 %s447_s16, 4  ;;  %s450_s22 = int_to_ptr.hbm [resolvable:$true] %s449_s22 }
  0x2d   : > { %1165 = dma.hbm_to_vmem [thread:$0]  (!%p1163_p2), %s450_s22, 128, %s452_s9, %s439_s19  }
  0x2e   : > { %1381 = dma.done.wait (%p1551_p4), %s463_s13, 128  }
  0x2f   : > { %1383 = vsyncadd (%p1551_p4), %s463_s13, 4294967168 }
  0x30   : > { %1385 = dma.done.wait (%p1541_p1), [#allocation7], 128  }
  0x31   : > { %1387 = vsyncadd (%p1541_p1), [#allocation7], 4294967168  ;;  %v521_v0 = vld [vmem:[%s1785_s2 + $0x18] sm:$0xff]  ;;  %v520_v1 = vld [vmem:[%s1785_s2 + $0x10] sm:$0xff]  ;;  %vm526_vm0 = vcmask 261120   ;;  %s1417_s20 = smov 64  }
  0x32   : > { %542 = vmatpush.msra.mxu0 %v521_v0  ;;  %v519_v2 = vld [vmem:[%s1785_s2 + $0x8] sm:$0xff]  ;;  %v518_v3 = vld [vmem:[%s1785_s2] sm:$0xff]  ;;  %s1418_s22 = smov 120   ;;  %s1419_s13 = smov 96   ;;  %vm554_vm1 = vcmask 64512   ;;  %v550_v14 = vld [vmem:[#allocation6] sm:$0xff] }
  0x33   : > { %v1632_v4 = vld [vmem:[%s466_s11] sm:$0xff]  ;;  %v1238_v5 = vld [vmem:[%s1786_s3] ss:$0 sm:$0xff]  ;;  %s1420_s1 = smov 88   ;;  %s1421_s11 = smov 56   ;;  %vm690_vm2 = vcmask 130112  }
  0x34   : > { %543 = vmatpush.msra.mxu0 %v520_v1  ;;  %s1422_s9 = smov 72   ;;  %s1423_s14 = smov 104   ;;  %vm763_vm3 = vcmask 195712   ;;  %vm836_vm4 = vcmask 261312   ;;  %vm954_vm9 = vcmask 523264  }
  0x35   : > { %s1424_s16 = smov 112   ;;  %s1425_s28 = smov 48  }
  0x36   : > { %544 = vmatpush.msra.mxu0 %v519_v2  ;;  %s1426_s26 = smov 40   ;;  %s1427_s23 = smov 80  }
  0x37   : > { %s1428_s19 = smov 8   ;;  %s1429_s21 = smov 16  }
  0x38   : > { %545 = vmatpush.msra.mxu0 %v518_v3  ;;  %s1430_s27 = smov 24  }
  0x39   : > { %1130 = vmatmul.msk.f32.vlgmr.msra.gmra.mxu0 %vm526_vm0, %v1632_v4 }
  0xb6   : > { %v547_v6 = vpop.f32.mrf.mxu0 }
  0xb7   : > { %v548_v7 = vadd.f32 %v1238_v5, %v547_v6 }
  0xb9   : > { %590 = vrot.lane.b32.xlu2 %v548_v7, %s1417_s20  ;;  %619 = vrot.lane.b32.xlu1 %v548_v7, %s1418_s22  ;;  %s1824_s22 = sld [smem:[#allocation19_spill]] }
  0xba   : > { %552 = vrot.lane.b32.xlu0 %v548_v7, %s1419_s13  ;;  %s1825_s13 = sld [smem:[#allocation13_spill]] }
  0xbb   : > { %s1829_s20 = sld [smem:[#allocation21_spill]] }
  0xc2   : > { %621 = vrot.lane.b32.xlu0 %v548_v7, %s1420_s1  ;;  %s1147_s1 = sshll.u32 %s1825_s13, 3 }
  0xca   : > { %658 = vrot.lane.b32.xlu0 %v548_v7, %s1421_s11  ;;  %s1013_s11 = scalar_lea.sflag [#allocation5], %s1606_s24 }
  0xd2   : > { %767 = vrot.lane.b32.xlu0 %v548_v7, %s1422_s9 }
  0xda   : > { %765 = vrot.lane.b32.xlu0 %v548_v7, %s1423_s14  ;;  %s1826_s14 = sld [smem:[#allocation20_spill]] }
  0xe2   : > { %692 = vrot.lane.b32.xlu0 %v548_v7, %s1424_s16 }
 0x113   : > { %v591_v8 = vpop.permute.xlu2 %590 }
 0x114   : > { %611 = vmatpush.msra.mxu2 %v591_v8 }
 0x12b   : > { %v620_v11 = vpop.permute.xlu1 %619 }
 0x12c   : > { %v553_v9 = vpop.permute.xlu0 %552 }
 0x12d   : > { %1131 = vmatpush.xpose.msk.msra.mxu1 %vm554_vm1, %v553_v9 }
 0x130   : > { %1132 = vmatmul.msk.f32.vlgmr.msra.gmra.mxu1 %vm554_vm1, %v548_v7 }
 0x134   : > { %v622_v10 = vpop.permute.xlu0 %621 }
 0x135   : > { %1134 = vmatpush.xpose.msk.msra.mxu3 %vm554_vm1, %v622_v10  ;;  %v842_v10 = vld [vmem:[%s1787_s4 + $0x18] sm:$0xff] }
 0x138   : > { %1135 = vmatmul.msk.f32.vlgmr.msra.gmra.mxu3 %vm554_vm1, %v620_v11  ;;  %v841_v11 = vld [vmem:[%s1787_s4 + $0x10] sm:$0xff] }
 0x13c   : > { %v659_v12 = vpop.permute.xlu0 %658 }
 0x13d   : > { %679 = vmatpush.msrb.mxu2 %v659_v12  ;;  %v840_v12 = vld [vmem:[%s1787_s4 + $0x8] sm:$0xff] }
 0x144   : > { %v768_v25 = vpop.permute.xlu0 %767 }
 0x14c   : > { %v766_v28 = vpop.permute.xlu0 %765 }
 0x154   : > { %v693_v34 = vpop.permute.xlu0 %692 }
 0x1ad   : > { %v576_v13 = vpop.f32.mrf.mxu1 }
 0x1ae   : > { %v579_v15 = vmul.f32 0.35355338, %v576_v13  ;;  %v839_v13 = vld [vmem:[%s1787_s4] sm:$0xff] }
 0x1b0   : > { %v580_v16 = vadd.f32 %v579_v15, %v550_v14 }
 0x1b2   : > { %v581_v17 = vsel %vm554_vm1, %v580_v16, -inf }
 0x1b3   : > { %582 = vmax.xlane.f32.xlu1 %v581_v17  ;;  %v1239_v17 = vld [vmem:[%s1788_s5] ss:$0 sm:$0xff] }
 0x1bb   : > { %v644_v18 = vpop.f32.mrf.mxu3 }
 0x1bc   : > { %v647_v19 = vmul.f32 0.35355338, %v644_v18 }
 0x1be   : > { %v648_v20 = vadd.f32 %v647_v19, %v550_v14 }
 0x1c0   : > { %v649_v21 = vsel %vm554_vm1, %v648_v20, -inf }
 0x1c1   : > { %650 = vmax.xlane.f32.xlu2 %v649_v21 }
 0x1cc   : > { %731 = vrot.lane.b32.xlu1 %v548_v7, %s1425_s28 }
 0x1d4   : > { %804 = vrot.lane.b32.xlu1 %v548_v7, %s1426_s26  ;;  %s1827_s26 = sld [smem:[#allocation22_spill]] }
 0x1d9   : > { %694 = vrot.lane.b32.xlu2 %v548_v7, %s1427_s23 }
 0x1da   : > { %s1024_s23 = scalar_lea.hbm %s1827_s26, %s1147_s1 }
 0x1db   : > { %s1028_s0 = sshll.u32 %s1024_s23, 4  ;;  %s1029_s0 = int_to_ptr.hbm [resolvable:$true] %s1028_s0 }
 0x1dc   : > { %s1342_s9 = sshra.s32 %s1029_s0, 4  ;;  %s1343_s9 = int_to_ptr.hbm [resolvable:$true] %s1342_s9 }
 0x1dd   : > { %s1344_s1 = scalar_lea.hbm %s1343_s9, 8  ;;  %p1349_p11 = scmp.lt.s32.totalorder %s1343_s9, %s1827_s26 }
 0x1de   : > { %p1345_p1 = scmp.ne.s32.totalorder %s1343_s9, %s1344_s1 }
 0x1e0   : > { %p1346_p4 = pnand %p1345_p1, %p1586_p5 }
 0x1e2   : > { %p1347_p8 = pneg %p1346_p4 }
 0x226   : > { %v583_v22 = vpop.xlane.xlu1 %582 }
 0x227   : > { %v584_v23 = vsub.f32 %v580_v16, %v583_v22  ;;  %v1431_v22 = vmov 32.0  }
 0x229   : > { %v585_v24 = vmul.f32 1.442695, %v584_v23 }
 0x22b   : > { %1246 = vpow2.f32 %v585_v24 }
 0x231   : > { %v1247_v26 = vpop.eup %1246 }
 0x232   : > { %1133 = vmatmul.msk.f32.vlgmr.msra.gmra.mxu2 %vm554_vm1, %v1247_v26  ;;  %v587_v47 = vsel %vm554_vm1, %v1247_v26, 0.0 }
 0x233   : > { %1140 = vmatpush.xpose.msk.msra.mxu2 %vm554_vm1, %v768_v25 }
 0x234   : > { %v651_v27 = vpop.xlane.xlu2 %650 }
 0x235   : > { %v652_v29 = vsub.f32 %v648_v20, %v651_v27 }
 0x237   : > { %v653_v30 = vmul.f32 1.442695, %v652_v29 }
 0x239   : > { %1248 = vpow2.f32 %v653_v30 }
 0x23c   : > { %v695_v31 = vpop.permute.xlu2 %694 }
 0x23d   : > { %1137 = vmatpush.xpose.msk.msrb.mxu1 %vm554_vm1, %v695_v31 }
 0x23e   : > { %v732_v32 = vpop.permute.xlu1 %731 }
 0x23f   : > { %v1249_v33 = vpop.eup %1248  ;;  %752 = vmatpush.msrb.mxu3 %v732_v32 }
 0x240   : > { %1136 = vmatmul.msk.f32.vlgmr.msrb.gmra.mxu2 %vm554_vm1, %v1249_v33  ;;  %1138 = vmatmul.msk.f32.vlgmr.msrb.gmra.mxu1 %vm554_vm1, %v693_v34  ;;  %v655_v42 = vsel %vm554_vm1, %v1249_v33, 0.0  ;;  %v913_v33 = vld [vmem:[%s1791_s8 + $0x18] sm:$0xff]  ;;  %v912_v34 = vld [vmem:[%s1791_s8 + $0x10] sm:$0xff] }
 0x241   : > { %862 = vmatpush.msra.mxu1 %v842_v10  ;;  %933 = vmatpush.msra.mxu3 %v913_v33 }
 0x243   : > { %863 = vmatpush.msra.mxu1 %v841_v11  ;;  %934 = vmatpush.msra.mxu3 %v912_v34 }
 0x245   : > { %864 = vmatpush.msra.mxu1 %v840_v12 }
 0x246   : > { %v805_v35 = vpop.permute.xlu1 %804 }
 0x247   : > { %825 = vmatpush.msrb.mxu2 %v805_v35  ;;  %865 = vmatpush.msra.mxu1 %v839_v13  ;;  %v911_v35 = vld [vmem:[%s1791_s8 + $0x8] sm:$0xff] }
 0x248   : > { %1141 = vmatmul.msk.f32.vlgmr.msra.gmra.mxu2 %vm554_vm1, %v766_v28  ;;  %935 = vmatpush.msra.mxu3 %v911_v35 }
 0x2b5   : > { %v613_v36 = vpop.f32.mrf.mxu2 }
 0x2bd   : > { %v717_v37 = vpop.f32.mrf.mxu1 }
 0x2be   : > { %v720_v38 = vmul.f32 0.35355338, %v717_v37  ;;  %v949_v37 = vld [vmem:[%s1793_s10 + $0x38] sm:$0xff] }
 0x2bf   : > { %966 = vmatpush.msrb.mxu0 %v949_v37 }
 0x2c0   : > { %v721_v39 = vadd.f32 %v720_v38, %v550_v14  ;;  %v948_v38 = vld [vmem:[%s1793_s10 + $0x30] sm:$0xff] }
 0x2c1   : > { %967 = vmatpush.msrb.mxu0 %v948_v38 }
 0x2c2   : > { %v722_v40 = vsel %vm554_vm1, %v721_v39, -inf }
 0x2c3   : > { %v681_v41 = vpop.f32.mrf.mxu2  ;;  %723 = vmax.xlane.f32.xlu2 %v722_v40 }
 0x2cb   : > { %v790_v43 = vpop.f32.mrf.mxu2  ;;  %656 = vadd.xlane.f32.xlu2 %v655_v42  ;;  %v946_v42 = vld [vmem:[%s1793_s10 + $0x20] sm:$0xff] }
 0x2cc   : > { %v793_v44 = vmul.f32 0.35355338, %v790_v43 }
 0x2ce   : > { %v794_v45 = vadd.f32 %v793_v44, %v550_v14  ;;  %v945_v44 = vld [vmem:[%s1793_s10 + $0x18] sm:$0xff] }
 0x2d0   : > { %v795_v46 = vsel %vm554_vm1, %v794_v45, -inf }
 0x2d1   : > { %796 = vmax.xlane.f32.xlu0 %v795_v46 }
 0x2d9   : > { %588 = vadd.xlane.f32.xlu0 %v587_v47 }
 0x336   : > { %v724_v48 = vpop.xlane.xlu2 %723 }
 0x337   : > { %v725_v49 = vsub.f32 %v721_v39, %v724_v48  ;;  %v947_v39 = vld [vmem:[%s1793_s10 + $0x28] sm:$0xff] }
 0x338   : > { %968 = vmatpush.msrb.mxu0 %v947_v39 }
 0x339   : > { %v726_v50 = vmul.f32 1.442695, %v725_v49 }
 0x33a   : > { %969 = vmatpush.msrb.mxu0 %v946_v42 }
 0x33b   : > { %1250 = vpow2.f32 %v726_v50 }
 0x33c   : > { %970 = vmatpush.msrb.mxu0 %v945_v44 }
 0x33e   : > { %v657_v61 = vpop.xlane.xlu2 %656 }
 0x341   : > { %v1251_v51 = vpop.eup %1250 }
 0x342   : > { %1139 = vmatmul.msk.f32.vlgmr.msrb.gmra.mxu3 %vm554_vm1, %v1251_v51  ;;  %v728_v52 = vsel %vm554_vm1, %v1251_v51, 0.0  ;;  %v1240_v51 = vld [vmem:[%s1789_s6] ss:$0 sm:$0xff] }
 0x343   : > { %729 = vadd.xlane.f32.xlu1 %v728_v52 }
 0x344   : > { %v797_v53 = vpop.xlane.xlu0 %796 }
 0x345   : > { %v798_v54 = vsub.f32 %v794_v45, %v797_v53 }
 0x347   : > { %v799_v55 = vmul.f32 1.442695, %v798_v54  ;;  %v1241_v54 = vld [vmem:[%s1790_s7] ss:$0 sm:$0xff] }
 0x349   : > { %1252 = vpow2.f32 %v799_v55 }
 0x34c   : > { %v589_v56 = vpop.xlane.xlu0 %588 }
 0x34d   : > { %1254 = vrcp.f32 %v589_v56 }
 0x34e   : > { %1256 = vrcp.f32 %v657_v61 }
 0x34f   : > { %v1253_v57 = vpop.eup %1252 }
 0x350   : > { %1142 = vmatmul.msk.f32.vlgmr.msrb.gmra.mxu2 %vm554_vm1, %v1253_v57  ;;  %v801_v58 = vsel %vm554_vm1, %v1253_v57, 0.0  ;;  %v944_v57 = vld [vmem:[%s1793_s10 + $0x10] sm:$0xff] }
 0x351   : > { %802 = vadd.xlane.f32.xlu2 %v801_v58  ;;  %971 = vmatpush.msrb.mxu0 %v944_v57  ;;  %v943_v58 = vld [vmem:[%s1793_s10 + $0x8] sm:$0xff] }
 0x353   : > { %v1255_v59 = vpop.eup %1254  ;;  %972 = vmatpush.msrb.mxu0 %v943_v58 }
 0x354   : > { %v617_v60 = vmul.f32 %v1255_v59, %v613_v36  ;;  %v1257_v62 = vpop.eup %1256  ;;  %v910_v36 = vld [vmem:[%s1791_s8] sm:$0xff] }
 0x355   : > { %v685_v63 = vmul.f32 %v1257_v62, %v681_v41  ;;  %936 = vmatpush.msra.mxu3 %v910_v36  ;;  %v942_v59 = vld [vmem:[%s1793_s10] sm:$0xff] }
 0x356   : > { %618 = vst.msk [vmem:[#allocation2] sm:$0xff] %vm554_vm1, %v617_v60  ;;  %973 = vmatpush.msrb.mxu0 %v942_v59 }
 0x369   : > { %687 = vrot.lane.b32.xlu2 %v685_v63, %s1428_s19 }
 0x3b6   : > { %v730_v0 = vpop.xlane.xlu1 %729 }
 0x3b7   : > { %1258 = vrcp.f32 %v730_v0  ;;  %v1243_v0 = vld [vmem:[%s1824_s22] ss:$0 sm:$0xff]  ;;  %s516_s22 = scalar_lea.vmem [#allocation8], %s1127_s12  ;;  %s1348_s12 = scalar_lea.hbm %s1827_s26, 16 }
 0x3b8   : > { %s1026_s13 = sshll.u32 %s516_s22, 4  ;;  %p1350_p12 = scmp.lt.s32.totalorder %s1348_s12, %s1344_s1  ;;  %s1027_s13 = int_to_ptr.vmem [resolvable:$true] %s1026_s13 }
 0x3ba   : > { %p1351_p13 = por %p1350_p12, %p1349_p11 }
 0x3bc   : > { %p1352_p0 = pnand %p1351_p13, %p1347_p8 }
 0x3bd   : > { %v1259_v2 = vpop.eup %1258 }
 0x3c4   : > { %v803_v1 = vpop.xlane.xlu2 %802 }
 0x3c5   : > { %v754_v3 = vpop.f32.mrf.mxu3  ;;  %1260 = vrcp.f32 %v803_v1 }
 0x3c6   : > { %v758_v5 = vmul.f32 %v1259_v2, %v754_v3  ;;  %1262 = vrcp.f32 %v1431_v22 }
 0x3c8   : > { %760 = vrot.lane.b32.xlu0 %v758_v5, %s1429_s21  ;;  %s1823_s21 = sld [smem:[#allocation18_spill]] }
 0x3cb   : > { %v1261_v7 = vpop.eup %1260 }
 0x3cc   : > { %v688_v6 = vpop.permute.xlu2 %687  ;;  %v1263_v23 = vpop.eup %1262 }
 0x3cd   : > { %691 = vst.msk [vmem:[#allocation2] sm:$0xff] %vm690_vm2, %v688_v6  ;;  %v875_v24 = vmul.f32 32.0, %v1263_v23  ;;  %vm879_vm5 = vweird.f32 %v1263_v23 }
 0x3ce   : > { %v1242_v60 = vld [vmem:[%s1823_s21] ss:$0 sm:$0xff] }
 0x3cf   : > { %v876_v25 = vsub.f32 1.0, %v875_v24 }
 0x3d1   : > { %v877_v26 = vmul.f32 %v1263_v23, %v876_v25 }
 0x3d3   : > { %v827_v8 = vpop.f32.mrf.mxu2  ;;  %v878_v27 = vadd.f32 %v1263_v23, %v877_v26 }
 0x3d4   : > { %v831_v9 = vmul.f32 %v1261_v7, %v827_v8 }
 0x3d5   : > { %v1678_v28 = vsel %vm879_vm5, %v1263_v23, %v878_v27  ;;  %v1245_v23 = vld [vmem:[%s1829_s20] ss:$0 sm:$0xff] }
 0x3d6   : > { %833 = vrot.lane.b32.xlu0 %v831_v9, %s1430_s27 }
 0x43a   : > { %v761_v14 = vpop.permute.xlu0 %760 }
 0x43b   : > { %764 = vst.msk [vmem:[#allocation2] sm:$0xff] %vm763_vm3, %v761_v14 }
 0x448   : > { %v834_v15 = vpop.permute.xlu0 %833 }
 0x449   : > { %837 = vst.msk [vmem:[#allocation2] sm:$0xff] %vm836_vm4, %v834_v15 }
 0x450   : > { %v838_v16 = vld [vmem:[#allocation2] sm:$0xff] }
 0x451   : > { %1143 = vmatmul.msk.f32.vlgmr.msra.gmra.mxu1 %vm526_vm0, %v838_v16 }
 0x4ce   : > { %v867_v18 = vpop.f32.mrf.mxu1 }
 0x4cf   : > { %v868_v19 = vadd.f32 %v1239_v17, %v867_v18 }
 0x4d1   : > { %v870_v20 = vadd.f32 %v868_v19, %v1632_v4 }
 0x4d3   : > { %v871_v21 = vsel %vm526_vm0, %v870_v20, 0.0 }
 0x4d4   : > { %872 = vadd.xlane.f32.xlu2 %v871_v21 }
 0x547   : > { %v873_v29 = vpop.xlane.xlu2 %872 }
 0x548   : > { %v881_v30 = vmul.f32 %v1678_v28, %v873_v29 }
 0x54a   : > { %v882_v31 = vsub.f32 %v870_v20, %v881_v30  ;;  %v1244_v20 = vld [vmem:[%s1826_s14] ss:$0 sm:$0xff] }
 0x54c   : > { %v883_v32 = vmul.f32 %v882_v31, %v882_v31 }
 0x54e   : > { %v884_v4 = vsel %vm526_vm0, %v883_v32, 0.0 }
 0x54f   : > { %885 = vadd.xlane.f32.xlu1 %v884_v4 }
 0x5c2   : > { %v886_v40 = vpop.xlane.xlu1 %885 }
 0x5c3   : > { %v887_v41 = vmul.f32 %v886_v40, %v1678_v28 }
 0x5c5   : > { %v888_v43 = vadd.f32 1e-05, %v887_v41 }
 0x5c7   : > { %1264 = vrsqrt.f32 %v888_v43  ;;  %vm895_vm7 = vweird.f32 %v888_v43 }
 0x5cd   : > { %v1265_v45 = vpop.eup %1264 }
 0x5ce   : > { %v890_v46 = vmul.f32 %v1265_v45, %v888_v43  ;;  %vm896_vm6 = vweird.f32 %v1265_v45 }
 0x5cf   : > { %vm897_vm8 = vmor %vm895_vm7, %vm896_vm6 }
 0x5d0   : > { %v891_v47 = vmul.f32 %v1265_v45, %v890_v46 }
 0x5d2   : > { %v892_v48 = vmul.f32 0.5, %v891_v47 }
 0x5d4   : > { %v893_v49 = vsub.f32 1.5, %v892_v48 }
 0x5d6   : > { %v894_v50 = vmul.f32 %v1265_v45, %v893_v49 }
 0x5d8   : > { %v898_v52 = vsel %vm897_vm8, %v1265_v45, %v894_v50 }
 0x5d9   : > { %v899_v53 = vmul.f32 %v898_v52, %v882_v31 }
 0x5db   : > { %v904_v55 = vmul.f32 %v1240_v51, %v899_v53 }
 0x5dd   : > { %v909_v56 = vadd.f32 %v1241_v54, %v904_v55 }
 0x5df   : > { %1144 = vmatmul.msk.f32.vlgmr.msra.gmra.mxu3 %vm526_vm0, %v909_v56 }
 0x662   : > { %v938_v61 = vpop.f32.mrf.mxu3 }
 0x663   : > { %v939_v62 = vadd.f32 %v1242_v60, %v938_v61 }
 0x665   : > { %v941_v63 = vmax.f32 %v939_v62, 0.0 }
 0x667   : > { %1145 = vmatmul.msk.f32.vlgmr.msrb.gmra.mxu0 %vm954_vm9, %v941_v63 }
 0x6e4   : > { %v975_v1 = vpop.f32.mrf.mxu0 }
 0x6e5   : > { %v976_v2 = vadd.f32 %v1243_v0, %v975_v1 }
 0x6e7   : > { %v978_v3 = vadd.f32 %v976_v2, %v909_v56 }
 0x6e9   : > { %v979_v5 = vsel %vm526_vm0, %v978_v3, 0.0 }
 0x6ea   : > { %980 = vadd.xlane.f32.xlu0 %v979_v5 }
 0x75d   : > { %v981_v6 = vpop.xlane.xlu0 %980 }
 0x75e   : > { %v982_v7 = vmul.f32 %v981_v6, %v1678_v28 }
 0x760   : > { %v983_v8 = vsub.f32 %v978_v3, %v982_v7 }
 0x762   : > { %v984_v9 = vmul.f32 %v983_v8, %v983_v8 }
 0x764   : > { %v985_v10 = vsel %vm526_vm0, %v984_v9, 0.0 }
 0x765   : > { %986 = vadd.xlane.f32.xlu1 %v985_v10 }
 0x7d8   : > { %v987_v11 = vpop.xlane.xlu1 %986 }
 0x7d9   : > { %v988_v12 = vmul.f32 %v987_v11, %v1678_v28 }
 0x7db   : > { %v989_v13 = vadd.f32 1e-05, %v988_v12 }
 0x7dd   : > { %1266 = vrsqrt.f32 %v989_v13  ;;  %vm996_vm11 = vweird.f32 %v989_v13 }
 0x7e3   : > { %v1267_v14 = vpop.eup %1266 }
 0x7e4   : > { %v991_v15 = vmul.f32 %v1267_v14, %v989_v13  ;;  %vm997_vm10 = vweird.f32 %v1267_v14 }
 0x7e5   : > { %vm998_vm12 = vmor %vm996_vm11, %vm997_vm10 }
 0x7e6   : > { %v992_v16 = vmul.f32 %v1267_v14, %v991_v15 }
 0x7e8   : > { %v993_v17 = vmul.f32 0.5, %v992_v16 }
 0x7ea   : > { %v994_v18 = vsub.f32 1.5, %v993_v17 }
 0x7ec   : > { %v995_v19 = vmul.f32 %v1267_v14, %v994_v18 }
 0x7ee   : > { %v999_v21 = vsel %vm998_vm12, %v1267_v14, %v995_v19 }
 0x7ef   : > { %v1000_v22 = vmul.f32 %v999_v21, %v983_v8 }
 0x7f1   : > { %v1005_v24 = vmul.f32 %v1244_v20, %v1000_v22 }
 0x7f3   : > { %v1010_v25 = vadd.f32 %v1245_v23, %v1005_v24 }
 0x7f5   : > { %1011 = vst.msk [vmem:[%s516_s22] sm:$0xff] %vm526_vm0, %v1010_v25 }
 0x7f6   : > { %1355 = shalt.err (!%p1352_p0)
}
 0x7f7   : > { %1156 = dma.vmem_to_hbm [thread:$0]  (%p1586_p5), %s1027_s13, 128, %s1029_s0, %s1013_s11  }
 0x7f8 PF: > { %s1830_s24 = sld [smem:[#allocation12_spill]]  ;;  %p1167_p3 = pnand %p1123_p9, %p1556_p6 }
 0x7fa   : > { %p1168_p7 = pneg %p1167_p3 }
 0x7fe   : > { %s1040_s27 = sand.u32 1, %s1830_s24  }
 0x7ff   : > { %s1041_s20 = scalar_lea.sflag [#allocation5], %s1040_s27 }
 0x800   : > { %1389 = dma.done.wait (%p1168_p7), %s1041_s20, 128  }
 0x801   : > { %1391 = vsyncadd (%p1168_p7), %s1041_s20, 4294967168  ;;  %s31_s18 = sadd.s32 1, %s1414_s18   ;;  %s1832_s22 = smov %s1595_s29 }
 0x802   : > { %p28_p10 = scmp.ge.s32.totalorder %s31_s18, 4   ;;  %s1833_s29 = smov %s1398_s30 }
 0x803   : > { %s1834_s30 = smov %s1402_s15  ;;  %s1835_s15 = smov %s1832_s22 }
 0x804   : > { %s1836_s16 = smov %s1410_s17  ;;  %s1837_s17 = smov %s1839_s25 }
 0x805   :  { %30 = sbr.rel (!%p28_p10) target bundleno = 15 (0xf), region = 125 }
 0x80a   :  { %1047 = vsyncpa [#allocation4], 1 }
 0x80b   :  { %1049 = vsyncpa [#allocation4 + $0x1], 1 }
 0x80c   :  { %1050 = vsyncpa [#allocation7], 1 }
 0x80d   :  { %1051 = vsyncpa [#allocation5], 1 }
 0x80e   :  { %1053 = vsyncpa [#allocation5 + $0x1], 1 }

</bundles_post_ra>
